<compile_context>
chip_gen: v7x
topology: tpu7x:2x2x1
jax: 0.10.0
libtpu: 0.0.40
codegen_flags: <defaults>
</compile_context>

<pallas_src>
import jax
import jax.numpy as jnp
from jax.experimental import pallas as pl
from jax.experimental.pallas import tpu as pltpu


# ---------------------------------------------------------------------------
# Kernels
# ---------------------------------------------------------------------------
def _fused_kernel(x_ref, W1, b1, W2, b2, fW1, fb1, fW2p, fb2, out_ref):
    """Fully fused forward: block-diagonal subnet layers (best on 256-wide MXU)."""
    x = x_ref[...]                                                  # (Bt, D) bf16
    h = jnp.dot(x, W1[...], preferred_element_type=jnp.float32) + b1[...]
    h = jnp.maximum(h, 0.0)                                         # (Bt, 384) f32
    # Dropout(0.3): identity in eval mode.
    h = jnp.dot(h.astype(jnp.bfloat16), W2[...],
                preferred_element_type=jnp.float32) + b2[...]
    h = jnp.maximum(h, 0.0)                                         # (Bt, 192) == concat([r,m,c])
    z = jnp.dot(h.astype(jnp.bfloat16), fW1[...],
                preferred_element_type=jnp.float32) + fb1[...]
    z = jnp.maximum(z, 0.0)                                         # (Bt, 64)
    head = jnp.dot(z.astype(jnp.bfloat16), fW2p[...],
                   preferred_element_type=jnp.float32)              # (Bt, 128)
    out_ref[...] = head[:, 0:1] + fb2[...]                          # compact (Bt, 1) store


def _split_kernel(x_ref, W1, b1, rW2, mW2, cW2, b2, fW1, fb1, fW2p, fb2, out_ref):
    """v5e-friendly variant: layer-1 fused (MXU-neutral on the 128-wide MXU), layer-2
    kept as three separate (128,64) matmuls to avoid block-diagonal pass inflation."""
    x = x_ref[...]                                                  # (Bt, D) bf16
    h = jnp.dot(x, W1[...], preferred_element_type=jnp.float32) + b1[...]
    h = jnp.maximum(h, 0.0).astype(jnp.bfloat16)                    # (Bt, 384)
    b2v = b2[...]

    def branch(lo, W2b, blo):
        y = jnp.dot(h[:, lo:lo + 128], W2b[...],
                    preferred_element_type=jnp.float32) + b2v[:, blo:blo + 64]
        return jnp.maximum(y, 0.0)

    r = branch(0, rW2, 0)
    m = branch(128, mW2, 64)
    c = branch(256, cW2, 128)

    # final Linear(192, 64) on concat([r, m, c]) == sum of three row-split dots.
    z = (jnp.dot(r.astype(jnp.bfloat16), fW1[0:64, :],
                 preferred_element_type=jnp.float32)
         + jnp.dot(m.astype(jnp.bfloat16), fW1[64:128, :],
                   preferred_element_type=jnp.float32)
         + jnp.dot(c.astype(jnp.bfloat16), fW1[128:192, :],
                   preferred_element_type=jnp.float32)
         + fb1[...])
    z = jnp.maximum(z, 0.0)
    head = jnp.dot(z.astype(jnp.bfloat16), fW2p[...],
                   preferred_element_type=jnp.float32)
    out_ref[...] = head[:, 0:1] + fb2[...]


# ---------------------------------------------------------------------------
# Wrapper
# ---------------------------------------------------------------------------
def _round_up(x, m):
    return ((x + m - 1) // m) * m


def _is_128_wide_mxu():
    """v2-v5 generation chips have 128-wide MXUs; v6e/v7x are 256-wide."""
    try:
        kind = jax.devices()[0].device_kind.lower()
    except Exception:
        return False
    return any(tag in kind for tag in ("v2", "v3", "v4", "v5"))


def multi_omics_forward(rna, meth, cnv, params, *, block_b=2048):
    fused = len(params) == 8
    kernel = _fused_kernel if fused else _split_kernel

    B = rna.shape[0]
    # One lane-packed bf16 activation array: halves input HBM traffic, single DMA stream.
    x = jnp.concatenate([rna, meth, cnv], axis=1).astype(jnp.bfloat16)
    D = x.shape[1]

    # Batch tile: multiple of 16 (bf16 sublane packing).  If the whole batch would be a
    # single grid step, split it in two so both v7x TensorCores get work ("parallel" axis).
    rows = _round_up(B, 16)
    Bt = min(block_b, rows)
    if Bt == rows and rows >= 32:
        Bt = _round_up(rows // 2, 16)
    Bp = _round_up(B, Bt)
    if Bp != B:
        x = jnp.pad(x, ((0, Bp - B), (0, 0)))
    nb = Bp // Bt

    def resident(a):
        # Constant index_map -> block never changes -> weight stays VMEM-resident.
        return pl.BlockSpec(a.shape, lambda i: (0, 0))

    in_specs = [pl.BlockSpec((Bt, D), lambda i: (i, 0))] + [resident(w) for w in params]

    if fused:
        flops = 2 * Bp * (D * 384 + 384 * 192 + 192 * 64 + 64 * 128)
    else:
        flops = 2 * Bp * (D * 384 + 3 * 128 * 64 + 3 * 64 * 64 + 64 * 128)
    bytes_accessed = (Bp * D * 2                 # bf16 activation reads
                      + Bp * 4                   # compact f32 output writes
                      + sum(int(w.size) * w.dtype.itemsize for w in params))

    out = pl.pallas_call(
        kernel,
        out_shape=jax.ShapeDtypeStruct((Bp, 1), jnp.float32),
        grid=(nb,),
        in_specs=in_specs,
        out_specs=pl.BlockSpec((Bt, 1), lambda i: (i, 0)),
        compiler_params=pltpu.CompilerParams(
            dimension_semantics=("parallel",),          # megacore sharding on v7x
            vmem_limit_bytes=32 * 1024 * 1024),         # ample; ~8 MiB used at Bt=2048
        cost_estimate=pl.CostEstimate(
            flops=flops, transcendentals=0, bytes_accessed=bytes_accessed),
    )(x, *params)

    return out[:B]


# ---------------------------------------------------------------------------
# Parameter construction: raw (PyTorch-like) params -> BN-folded, fused, bf16.
# ---------------------------------------------------------------------------
def init_raw_subnet(key, input_dim):
    ks = jax.random.split(key, 12)
    W1 = jax.random.normal(ks[0], (input_dim, 128), jnp.float32) * 0.05
    b1 = jax.random.normal(ks[1], (128,), jnp.float32) * 0.05
    g1 = 1.0 + 0.1 * jax.random.normal(ks[2], (128,), jnp.float32)
    be1 = 0.1 * jax.random.normal(ks[3], (128,), jnp.float32)
    mu1 = 0.1 * jax.random.normal(ks[4], (128,), jnp.float32)
    v1 = 0.5 + jax.random.uniform(ks[5], (128,), jnp.float32)
    W2 = jax.random.normal(ks[6], (128, 64), jnp.float32) * 0.05
    b2 = jax.random.normal(ks[7], (64,), jnp.float32) * 0.05
    g2 = 1.0 + 0.1 * jax.random.normal(ks[8], (64,), jnp.float32)
    be2 = 0.1 * jax.random.normal(ks[9], (64,), jnp.float32)
    mu2 = 0.1 * jax.random.normal(ks[10], (64,), jnp.float32)
    v2 = 0.5 + jax.random.uniform(ks[11], (64,), jnp.float32)
    return (W1, b1, g1, be1, mu1, v1, W2, b2, g2, be2, mu2, v2)


def init_raw_params(key, rna_dim, meth_dim, cnv_dim):
    k_r, k_m, k_c, k1, k2, k3, k4 = jax.random.split(key, 7)
    return dict(
        rna=init_raw_subnet(k_r, rna_dim),
        meth=init_raw_subnet(k_m, meth_dim),
        cnv=init_raw_subnet(k_c, cnv_dim),
        fW1=jax.random.normal(k1, (192, 64), jnp.float32) * 0.05,
        fb1=jax.random.normal(k2, (64,), jnp.float32) * 0.05,
        fW2=jax.random.normal(k3, (64, 1), jnp.float32) * 0.05,
        fb2=jax.random.normal(k4, (1,), jnp.float32) * 0.05,
    )


def _fold_bn(W, b, gamma, beta, mean, var, eps=1e-5):
    """Fold eval-mode BatchNorm1d into the preceding Linear (W: (in,out), b: (out,))."""
    scale = gamma / jnp.sqrt(var + eps)
    return W * scale[None, :], (b - mean) * scale + beta


def prepare_params(raw, *, fuse_layer2=True):
    def fold_subnet(p):
        W1, b1, g1, be1, mu1, v1, W2, b2, g2, be2, mu2, v2 = p
        W1f, b1f = _fold_bn(W1, b1, g1, be1, mu1, v1)
        W2f, b2f = _fold_bn(W2, b2, g2, be2, mu2, v2)
        return W1f, b1f, W2f, b2f

    rW1, rb1, rW2, rb2 = fold_subnet(raw["rna"])
    mW1, mb1, mW2, mb2 = fold_subnet(raw["meth"])
    cW1, cb1, cW2, cb2 = fold_subnet(raw["cnv"])

    d_r, d_m, d_c = rW1.shape[0], mW1.shape[0], cW1.shape[0]
    D = d_r + d_m + d_c

    # Layer-1 block diagonal: (D, 384) -- one fused matmul instead of three.
    W1_bd = jnp.zeros((D, 384), jnp.float32)
    W1_bd = W1_bd.at[0:d_r, 0:128].set(rW1)
    W1_bd = W1_bd.at[d_r:d_r + d_m, 128:256].set(mW1)
    W1_bd = W1_bd.at[d_r + d_m:D, 256:384].set(cW1)
    b1_all = jnp.concatenate([rb1, mb1, cb1]).reshape(1, 384)
    b2_all = jnp.concatenate([rb2, mb2, cb2]).reshape(1, 192)

    # Lane-padded head weight: column 0 is the real (64, 1) head (kept MXU-friendly;
    # only column 0 of the result is stored).
    fW2p = jnp.zeros((64, 128), jnp.float32).at[:, 0].set(raw["fW2"][:, 0])
    fb1 = raw["fb1"].reshape(1, 64)
    fb2 = raw["fb2"].reshape(1, 1)

    bf16 = lambda w: w.astype(jnp.bfloat16)

    if fuse_layer2:
        # Layer-2 block diagonal: (384, 192); its output IS concat([r, m, c], dim=1).
        W2_bd = jnp.zeros((384, 192), jnp.float32)
        W2_bd = W2_bd.at[0:128, 0:64].set(rW2)
        W2_bd = W2_bd.at[128:256, 64:128].set(mW2)
        W2_bd = W2_bd.at[256:384, 128:192].set(cW2)
        return (bf16(W1_bd), b1_all, bf16(W2_bd), b2_all,
                bf16(raw["fW1"]), fb1, bf16(fW2p), fb2)

    return (bf16(W1_bd), b1_all, bf16(rW2), bf16(mW2), bf16(cW2), b2_all,
            bf16(raw["fW1"]), fb1, bf16(fW2p), fb2)


# ---------------------------------------------------------------------------
# References
# ---------------------------------------------------------------------------
def reference_forward(rna, meth, cnv, params):
    """Pure-JAX mirror of the kernel math (same folded bf16 weights, f32 accumulation)."""
    fused = len(params) == 8
    x = jnp.concatenate([rna, meth, cnv], axis=1).astype(jnp.bfloat16)
    dot = lambda a, w: jnp.dot(a.astype(jnp.bfloat16), w,
                               preferred_element_type=jnp.float32)
    relu = lambda a: jnp.maximum(a, 0.0)

    if fused:
        W1, b1, W2, b2, fW1, fb1, fW2p, fb2 = params
        h = relu(dot(x, W1) + b1)
        h = relu(dot(h, W2) + b2)
        z = relu(dot(h, fW1) + fb1)
    else:
        W1, b1, rW2, mW2, cW2, b2, fW1, fb1, fW2p, fb2 = params
        h = relu(dot(x, W1) + b1)
        r = relu(dot(h[:, 0:128], rW2) + b2[:, 0:64])
        m = relu(dot(h[:, 128:256], mW2) + b2[:, 64:128])
        c = relu(dot(h[:, 256:384], cW2) + b2[:, 128:192])
        z = relu(dot(r, fW1[0:64]) + dot(m, fW1[64:128])
                 + dot(c, fW1[128:192]) + fb1)
    return dot(z, fW2p)[:, 0:1] + fb2


def reference_forward_f32(rna, meth, cnv, raw):
    """Full-precision, un-folded reference matching the PyTorch module (eval mode)."""
    def bn(y, g, be, mu, v, eps=1e-5):
        return (y - mu) / jnp.sqrt(v + eps) * g + be

    def sub(x, p):
        W1, b1, g1, be1, mu1, v1, W2, b2, g2, be2, mu2, v2 = p
        h = jnp.maximum(bn(x @ W1 + b1, g1, be1, mu1, v1), 0.0)
        return jnp.maximum(bn(h @ W2 + b2, g2, be2, mu2, v2), 0.0)

    r = sub(rna, raw["rna"])
    m = sub(meth, raw["meth"])
    c = sub(cnv, raw["cnv"])
    z = jnp.maximum(jnp.concatenate([r, m, c], axis=1) @ raw["fW1"] + raw["fb1"], 0.0)
    return z @ raw["fW2"] + raw["fb2"]


# ---------------------------------------------------------------------------
if __name__ == "__main__":
    B = 2
    rna_dim, meth_dim, cnv_dim = 16, 32, 24

    key = jax.random.PRNGKey(0)
    k_in, k_p = jax.random.split(key)
    k_rna, k_meth, k_cnv = jax.random.split(k_in, 3)
    rna = jax.random.normal(k_rna, (B, rna_dim), jnp.float32)
    meth = jax.random.normal(k_meth, (B, meth_dim), jnp.float32)
    cnv = jax.random.normal(k_cnv, (B, cnv_dim), jnp.float32)

    raw = init_raw_params(k_p, rna_dim, meth_dim, cnv_dim)
    # Block-diagonal layer-2 fusion only on 256-wide-MXU chips (v6e/v7x); v5-generation
    # chips keep separate (128,64) matmuls to avoid doubling their MXU pass count.
    fuse_layer2 = not _is_128_wide_mxu()
    params = prepare_params(raw, fuse_layer2=fuse_layer2)

    out = multi_omics_forward(rna, meth, cnv, params)
    out = jax.block_until_ready(out)
    assert out.shape == (B, 1)

    # Exact-path parity (same folded bf16 params, f32 accumulation).
    ref = reference_forward(rna, meth, cnv, params)
    assert jnp.allclose(out, ref, atol=1e-3, rtol=1e-3), \
        float(jnp.max(jnp.abs(out - ref)))

    # Sanity vs. the full-precision, un-folded PyTorch-equivalent math
    # (loose tolerance covers the bf16 MXU cast).
    ref_f32 = reference_forward_f32(rna, meth, cnv, raw)
    assert jnp.allclose(out, ref_f32, atol=5e-2, rtol=5e-2), \
        float(jnp.max(jnp.abs(out - ref_f32)))

    print("KERNEL_OK")
</pallas_src>

<mosaic_0001>
module attributes {stable_mosaic.version = 11 : i64} {
  func.func @_fused_kernel(%arg0: i32, %arg1: memref<16x72xbf16, #tpu.memory_space<vmem>>, %arg2: memref<72x384xbf16, #tpu.memory_space<vmem>>, %arg3: memref<1x384xf32, #tpu.memory_space<vmem>>, %arg4: memref<384x192xbf16, #tpu.memory_space<vmem>>, %arg5: memref<1x192xf32, #tpu.memory_space<vmem>>, %arg6: memref<192x64xbf16, #tpu.memory_space<vmem>>, %arg7: memref<1x64xf32, #tpu.memory_space<vmem>>, %arg8: memref<64x128xbf16, #tpu.memory_space<vmem>>, %arg9: memref<1x1xf32, #tpu.memory_space<vmem>>, %arg10: memref<16x1xf32, #tpu.memory_space<vmem>>) attributes {dimension_semantics = [#tpu.dimension_semantics<parallel>], iteration_bounds = array<i64: 1>, scalar_prefetch = 0 : i64, scratch_operands = 0 : i64, tpu.core_type = #tpu.core_type<tc>, window_params = [{transform_indices = @transform_0, window_bounds = array<i64: 16, 72>}, {pipeline_mode = #tpu.pipeline_mode<synchronous>, transform_indices = @transform_1, window_bounds = array<i64: 72, 384>}, {pipeline_mode = #tpu.pipeline_mode<synchronous>, transform_indices = @transform_2, window_bounds = array<i64: 1, 384>}, {pipeline_mode = #tpu.pipeline_mode<synchronous>, transform_indices = @transform_3, window_bounds = array<i64: 384, 192>}, {pipeline_mode = #tpu.pipeline_mode<synchronous>, transform_indices = @transform_4, window_bounds = array<i64: 1, 192>}, {pipeline_mode = #tpu.pipeline_mode<synchronous>, transform_indices = @transform_5, window_bounds = array<i64: 192, 64>}, {pipeline_mode = #tpu.pipeline_mode<synchronous>, transform_indices = @transform_6, window_bounds = array<i64: 1, 64>}, {pipeline_mode = #tpu.pipeline_mode<synchronous>, transform_indices = @transform_7, window_bounds = array<i64: 64, 128>}, {pipeline_mode = #tpu.pipeline_mode<synchronous>, transform_indices = @transform_8, window_bounds = array<i64: 1, 1>}, {transform_indices = @transform_9, window_bounds = array<i64: 16, 1>}]} {
    %c0 = arith.constant 0 : index
    %c0_0 = arith.constant 0 : index
    %0 = vector.load %arg1[%c0, %c0_0] : memref<16x72xbf16, #tpu.memory_space<vmem>>, vector<16x72xbf16>
    %c0_1 = arith.constant 0 : index
    %c0_2 = arith.constant 0 : index
    %1 = vector.load %arg2[%c0_1, %c0_2] : memref<72x384xbf16, #tpu.memory_space<vmem>>, vector<72x384xbf16>
    %cst = arith.constant dense<0.000000e+00> : vector<16x384xf32>
    %2 = tpu.matmul %0, %1, %cst {dimension_numbers = #tpu.dot_dimension_numbers<[1], [0], [0], [1], [0, 0, 1, 1], [], []>} : vector<16x72xbf16>, vector<72x384xbf16>, vector<16x384xf32> -> vector<16x384xf32>
    %c0_3 = arith.constant 0 : index
    %c0_4 = arith.constant 0 : index
    %3 = vector.load %arg3[%c0_3, %c0_4] : memref<1x384xf32, #tpu.memory_space<vmem>>, vector<1x384xf32>
    %4 = vector.broadcast %3 : vector<1x384xf32> to vector<16x384xf32>
    %5 = arith.addf %2, %4 : vector<16x384xf32>
    %cst_5 = arith.constant 0.000000e+00 : f32
    %6 = vector.broadcast %cst_5 : f32 to vector<16x384xf32>
    %7 = arith.maximumf %5, %6 : vector<16x384xf32>
    %8 = arith.truncf %7 : vector<16x384xf32> to vector<16x384xbf16>
    %c0_6 = arith.constant 0 : index
    %c0_7 = arith.constant 0 : index
    %9 = vector.load %arg4[%c0_6, %c0_7] : memref<384x192xbf16, #tpu.memory_space<vmem>>, vector<384x192xbf16>
    %cst_8 = arith.constant dense<0.000000e+00> : vector<16x192xf32>
    %10 = tpu.matmul %8, %9, %cst_8 {dimension_numbers = #tpu.dot_dimension_numbers<[1], [0], [0], [1], [0, 0, 1, 1], [], []>} : vector<16x384xbf16>, vector<384x192xbf16>, vector<16x192xf32> -> vector<16x192xf32>
    %c0_9 = arith.constant 0 : index
    %c0_10 = arith.constant 0 : index
    %11 = vector.load %arg5[%c0_9, %c0_10] : memref<1x192xf32, #tpu.memory_space<vmem>>, vector<1x192xf32>
    %12 = vector.broadcast %11 : vector<1x192xf32> to vector<16x192xf32>
    %13 = arith.addf %10, %12 : vector<16x192xf32>
    %cst_11 = arith.constant 0.000000e+00 : f32
    %14 = vector.broadcast %cst_11 : f32 to vector<16x192xf32>
    %15 = arith.maximumf %13, %14 : vector<16x192xf32>
    %16 = arith.truncf %15 : vector<16x192xf32> to vector<16x192xbf16>
    %c0_12 = arith.constant 0 : index
    %c0_13 = arith.constant 0 : index
    %17 = vector.load %arg6[%c0_12, %c0_13] : memref<192x64xbf16, #tpu.memory_space<vmem>>, vector<192x64xbf16>
    %cst_14 = arith.constant dense<0.000000e+00> : vector<16x64xf32>
    %18 = tpu.matmul %16, %17, %cst_14 {dimension_numbers = #tpu.dot_dimension_numbers<[1], [0], [0], [1], [0, 0, 1, 1], [], []>} : vector<16x192xbf16>, vector<192x64xbf16>, vector<16x64xf32> -> vector<16x64xf32>
    %c0_15 = arith.constant 0 : index
    %c0_16 = arith.constant 0 : index
    %19 = vector.load %arg7[%c0_15, %c0_16] : memref<1x64xf32, #tpu.memory_space<vmem>>, vector<1x64xf32>
    %20 = vector.broadcast %19 : vector<1x64xf32> to vector<16x64xf32>
    %21 = arith.addf %18, %20 : vector<16x64xf32>
    %cst_17 = arith.constant 0.000000e+00 : f32
    %22 = vector.broadcast %cst_17 : f32 to vector<16x64xf32>
    %23 = arith.maximumf %21, %22 : vector<16x64xf32>
    %24 = arith.truncf %23 : vector<16x64xf32> to vector<16x64xbf16>
    %c0_18 = arith.constant 0 : index
    %c0_19 = arith.constant 0 : index
    %25 = vector.load %arg8[%c0_18, %c0_19] : memref<64x128xbf16, #tpu.memory_space<vmem>>, vector<64x128xbf16>
    %cst_20 = arith.constant dense<0.000000e+00> : vector<16x128xf32>
    %26 = tpu.matmul %24, %25, %cst_20 {dimension_numbers = #tpu.dot_dimension_numbers<[1], [0], [0], [1], [0, 0, 1, 1], [], []>} : vector<16x64xbf16>, vector<64x128xbf16>, vector<16x128xf32> -> vector<16x128xf32>
    %27 = vector.extract_strided_slice %26 {offsets = [0, 0], sizes = [16, 1], strides = [1, 1]} : vector<16x128xf32> to vector<16x1xf32>
    %c0_21 = arith.constant 0 : index
    %c0_22 = arith.constant 0 : index
    %28 = vector.load %arg9[%c0_21, %c0_22] : memref<1x1xf32, #tpu.memory_space<vmem>>, vector<1x1xf32>
    %29 = vector.broadcast %28 : vector<1x1xf32> to vector<16x1xf32>
    %30 = arith.addf %27, %29 : vector<16x1xf32>
    %c0_23 = arith.constant 0 : index
    %c0_24 = arith.constant 0 : index
    %31 = vector.load %arg10[%c0_23, %c0_24] : memref<16x1xf32, #tpu.memory_space<vmem>>, vector<16x1xf32>
    tpu.vector_store %arg10[%c0_23, %c0_24], %30 {strides = array<i32>} : memref<16x1xf32, #tpu.memory_space<vmem>>, vector<16x1xf32>,
    return
  }
  func.func @transform_0(%arg0: i32) -> (i32, i32) {
    %c0_i32 = arith.constant 0 : i32
    %c0_i32_0 = arith.constant 0 : i32
    return %arg0, %c0_i32 : i32, i32
  }
  func.func @transform_1(%arg0: i32) -> (i32, i32) {
    %c0_i32 = arith.constant 0 : i32
    %c0_i32_0 = arith.constant 0 : i32
    %c0_i32_1 = arith.constant 0 : i32
    return %c0_i32, %c0_i32_0 : i32, i32
  }
  func.func @transform_2(%arg0: i32) -> (i32, i32) {
    %c0_i32 = arith.constant 0 : i32
    %c0_i32_0 = arith.constant 0 : i32
    %c0_i32_1 = arith.constant 0 : i32
    return %c0_i32, %c0_i32_0 : i32, i32
  }
  func.func @transform_3(%arg0: i32) -> (i32, i32) {
    %c0_i32 = arith.constant 0 : i32
    %c0_i32_0 = arith.constant 0 : i32
    %c0_i32_1 = arith.constant 0 : i32
    return %c0_i32, %c0_i32_0 : i32, i32
  }
  func.func @transform_4(%arg0: i32) -> (i32, i32) {
    %c0_i32 = arith.constant 0 : i32
    %c0_i32_0 = arith.constant 0 : i32
    %c0_i32_1 = arith.constant 0 : i32
    return %c0_i32, %c0_i32_0 : i32, i32
  }
  func.func @transform_5(%arg0: i32) -> (i32, i32) {
    %c0_i32 = arith.constant 0 : i32
    %c0_i32_0 = arith.constant 0 : i32
    %c0_i32_1 = arith.constant 0 : i32
    return %c0_i32, %c0_i32_0 : i32, i32
  }
  func.func @transform_6(%arg0: i32) -> (i32, i32) {
    %c0_i32 = arith.constant 0 : i32
    %c0_i32_0 = arith.constant 0 : i32
    %c0_i32_1 = arith.constant 0 : i32
    return %c0_i32, %c0_i32_0 : i32, i32
  }
  func.func @transform_7(%arg0: i32) -> (i32, i32) {
    %c0_i32 = arith.constant 0 : i32
    %c0_i32_0 = arith.constant 0 : i32
    %c0_i32_1 = arith.constant 0 : i32
    return %c0_i32, %c0_i32_0 : i32, i32
  }
  func.func @transform_8(%arg0: i32) -> (i32, i32) {
    %c0_i32 = arith.constant 0 : i32
    %c0_i32_0 = arith.constant 0 : i32
    %c0_i32_1 = arith.constant 0 : i32
    return %c0_i32, %c0_i32_0 : i32, i32
  }
  func.func @transform_9(%arg0: i32) -> (i32, i32) {
    %c0_i32 = arith.constant 0 : i32
    %c0_i32_0 = arith.constant 0 : i32
    return %arg0, %c0_i32 : i32, i32
  }
}

</mosaic_0001>

<bundles_post_ra>
// kernel: tpu_custom_call.1
= control target key start
LH: loop header
LB: loop body
LE: loop exit
PB: predicated region body
PF: predicated region fallthrough
CT: control target
= control target key end

     0   :  { %v1134_v1 = vmov 0   ;;  %vm153_vm0 = vcmask 1043456   ;;  %vm149_vm1 = vcmask 588800   ;;  %v1135_v20 = vmov 0.0   ;;  %s1489_s1 = inlined_call_operand.vmem [shape: bf16[72,384], index: 1, kind: input, shape index: {}]   ;;  %s1490_s0 = inlined_call_operand.vmem [shape: bf16[16,72], index: 0, kind: input, shape index: {}]   ;;  %s1491_s3 = inlined_call_operand.vmem [shape: bf16[384,192], index: 3, kind: input, shape index: {}]   ;;  %s1492_s5 = inlined_call_operand.vmem [shape: bf16[192,64], index: 5, kind: input, shape index: {}]   ;;  %s1493_s2 = inlined_call_operand.vmem [shape: f32[1,384], index: 2, kind: input, shape index: {}]   ;;  %s1494_s7 = inlined_call_operand.vmem [shape: bf16[64,128], index: 7, kind: input, shape index: {}]   ;;  %s1495_s4 = inlined_call_operand.vmem [shape: f32[1,192], index: 4, kind: input, shape index: {}]   ;;  %s1496_s8 = inlined_call_operand.<no memory space> [shape: f32[1,1], index: 8, kind: input, shape index: {}]   ;;  %s1497_s6 = inlined_call_operand.vmem [shape: f32[1,64], index: 6, kind: input, shape index: {}]   ;;  %s1498_s9 = inlined_call_operand.vmem [shape: f32[16,1], index: 9, kind: output, shape index: {}]  }
   0x1   :  { %v1026_v0 = vld [vmem:[%s1489_s1 + $0x4] ss:$12 sps:$4 sm:$0xff]   ;;  %195 = vmatprep.mubr.bf16.mxu1 %v1134_v1  ;;  %v1028_v2 = vld [vmem:[%s1489_s1] ss:$12 sps:$4 sm:$0xff]   ;;  %v1029_v3 = vld [vmem:[%s1489_s1 + $0x1c] ss:$12 sps:$4 sm:$0xff]   ;;  %v57_v63 = vlaneseq }
   0x2   :  { %163 = vmatprep.subr.bf16.mxu1 %v1026_v0  ;;  %v1031_v4 = vld [vmem:[%s1489_s1 + $0x18] ss:$12 sps:$4 sm:$0xff]   ;;  %v1032_v5 = vld [vmem:[%s1489_s1 + $0x34] ss:$12 sps:$4 sm:$0xff]   ;;  %v1034_v6 = vld [vmem:[%s1489_s1 + $0x30] ss:$12 sps:$4 sm:$0xff]  }
   0x3   :  { %164 = vmatpush1.bf16.msra.mxu1 %v1028_v2  ;;  %v1035_v7 = vld [vmem:[%s1489_s1 + $0x4c] ss:$12 sps:$4 sm:$0xff]   ;;  %v53_v8 = vld [vmem:[%s1489_s1 + $0x60] sm:$0xff]  ;;  %v1037_v9 = vld [vmem:[%s1489_s1 + $0x48] ss:$12 sps:$4 sm:$0xff]   ;;  %vm1136_vm2 = vmmov 0  }
   0x4   :  { %165 = vmatprep.subr.bf16.mxu1 %v1029_v3  ;;  %v905_v10 = vcombine.high %v53_v8, %v53_v8  ;;  %v904_v11 = vcombine.low %v53_v8, %v53_v8  ;;  %v1046_v12 = vld [vmem:[%s1491_s3 + $0x4] ss:$8 sps:$4 sm:$0xff]   ;;  %v1048_v13 = vld [vmem:[%s1491_s3] ss:$8 sps:$4 sm:$0xff]   ;;  %v1049_v14 = vld [vmem:[%s1491_s3 + $0x14] ss:$8 sps:$4 sm:$0xff]  }
   0x5   :  { %556 = vmatprep.subr.bf16.mxu0 %v1046_v12  ;;  %v1051_v15 = vld [vmem:[%s1491_s3 + $0x10] ss:$8 sps:$4 sm:$0xff]   ;;  %v1052_v17 = vld [vmem:[%s1491_s3 + $0x24] ss:$8 sps:$4 sm:$0xff]   ;;  %v1041_v19 = vld [vmem:[%s1489_s1 + $0x8] ss:$12 sps:$4 sm:$0xff]  }
   0x6   :  { %557 = vmatpush1.bf16.msra.mxu0 %v1048_v13  ;;  %v155_v16 = vsel %vm153_vm0, %v904_v11, 0  ;;  %v1040_v18 = vld [vmem:[%s1490_s0] sm:$0xff]   ;;  %v1055_v22 = vld [vmem:[%s1491_s3 + $0x34] ss:$8 sps:$4 sm:$0xff]   ;;  %v1057_v24 = vld [vmem:[%s1491_s3 + $0x30] ss:$8 sps:$4 sm:$0xff]  }
   0x7   :  { %166 = vmatpush1.bf16.msra.mxu1 %v1031_v4  ;;  %558 = vmatprep.subr.bf16.mxu0 %v1049_v14  ;;  %v1054_v21 = vld [vmem:[%s1491_s3 + $0x20] ss:$8 sps:$4 sm:$0xff]   ;;  %v1058_v25 = vld [vmem:[%s1491_s3 + $0x44] ss:$8 sps:$4 sm:$0xff]   ;;  %v1044_v28 = vld [vmem:[%s1489_s1 + $0x50] ss:$12 sps:$4 sm:$0xff]  }
   0x8   :  { %167 = vmatprep.subr.bf16.mxu1 %v1032_v5  ;;  %v1042_v23 = vld [vmem:[%s1489_s1 + $0x20] ss:$12 sps:$4 sm:$0xff]   ;;  %v1043_v26 = vld [vmem:[%s1489_s1 + $0x38] ss:$12 sps:$4 sm:$0xff]   ;;  %v1061_v29 = vld [vmem:[%s1491_s3 + $0x54] ss:$8 sps:$4 sm:$0xff]  }
   0x9   :  { %v1060_v27 = vld [vmem:[%s1491_s3 + $0x40] ss:$8 sps:$4 sm:$0xff]   ;;  %v1063_v31 = vld [vmem:[%s1491_s3 + $0x50] ss:$8 sps:$4 sm:$0xff]   ;;  %v1064_v32 = vld [vmem:[%s1491_s3 + $0x64] ss:$8 sps:$4 sm:$0xff]  }
   0xa   :  { %559 = vmatpush1.bf16.msra.mxu0 %v1051_v15  ;;  %v1045_v30 = vld [vmem:[%s1489_s1 + $0x68] ss:$0 sps:$4 sm:$0xff]   ;;  %v1067_v35 = vld [vmem:[%s1491_s3 + $0x74] ss:$8 sps:$4 sm:$0xff]   ;;  %v1069_v36 = vld [vmem:[%s1491_s3 + $0x70] ss:$8 sps:$4 sm:$0xff]  }
   0xb   :  { %168 = vmatpush1.bf16.msra.mxu1 %v1034_v6  ;;  %560 = vmatprep.subr.bf16.mxu0 %v1052_v17  ;;  %v1066_v33 = vld [vmem:[%s1491_s3 + $0x60] ss:$8 sps:$4 sm:$0xff]   ;;  %v161_v34 = vsel %vm153_vm0, %v1045_v30, 0  ;;  %v1070_v37 = vld [vmem:[%s1491_s3 + $0x84] ss:$8 sps:$4 sm:$0xff]   ;;  %v1120_v56 = vld [vmem:[%s1492_s5 + $0x10] sm:$0xff]  }
   0xc   :  { %169 = vmatprep.subr.bf16.mxu1 %v1035_v7  ;;  %v1072_v38 = vld [vmem:[%s1491_s3 + $0x80] ss:$8 sps:$4 sm:$0xff]   ;;  %v1073_v39 = vld [vmem:[%s1491_s3 + $0x94] ss:$8 sps:$4 sm:$0xff]   ;;  %v1075_v40 = vld [vmem:[%s1491_s3 + $0x90] ss:$8 sps:$4 sm:$0xff]  }
   0xd   :  { %v1076_v41 = vld [vmem:[%s1491_s3 + $0xa4] ss:$8 sps:$4 sm:$0xff]   ;;  %v1078_v42 = vld [vmem:[%s1491_s3 + $0xa0] ss:$8 sps:$4 sm:$0xff]   ;;  %v1079_v43 = vld [vmem:[%s1491_s3 + $0xb4] ss:$8 sps:$4 sm:$0xff]  }
   0xe   :  { %561 = vmatpush1.bf16.msra.mxu0 %v1054_v21  ;;  %v1081_v44 = vld [vmem:[%s1491_s3 + $0xb0] ss:$8 sps:$4 sm:$0xff]   ;;  %v1082_v45 = vld [vmem:[%s1491_s3 + $0xc4] ss:$8 sps:$4 sm:$0xff]   ;;  %v1084_v46 = vld [vmem:[%s1491_s3 + $0xc0] ss:$8 sps:$4 sm:$0xff]  }
   0xf   :  { %170 = vmatpush1.bf16.msra.mxu1 %v1037_v9  ;;  %562 = vmatprep.subr.bf16.mxu0 %v1055_v22  ;;  %v1085_v47 = vld [vmem:[%s1491_s3 + $0xd4] ss:$8 sps:$4 sm:$0xff]   ;;  %v1087_v48 = vld [vmem:[%s1491_s3 + $0xd0] ss:$8 sps:$4 sm:$0xff]   ;;  %v1088_v49 = vld [vmem:[%s1491_s3 + $0xe4] ss:$8 sps:$4 sm:$0xff]  }
  0x10   :  { %907 = vmatprep.subr.msk.bf16.mxu1 %vm153_vm0, %v905_v10  ;;  %v1090_v50 = vld [vmem:[%s1491_s3 + $0xe0] ss:$8 sps:$4 sm:$0xff]   ;;  %v1091_v51 = vld [vmem:[%s1491_s3 + $0xf4] ss:$8 sps:$4 sm:$0xff]   ;;  %v1093_v52 = vld [vmem:[%s1491_s3 + $0xf0] ss:$8 sps:$4 sm:$0xff]  }
  0x11   :  { %v1096_v53 = vld [vmem:[%s1491_s3 + $0x104] ss:$8 sps:$4 sm:$0xff]   ;;  %v1121_v57 = vld [vmem:[%s1492_s5 + $0x18] sm:$0xff]   ;;  %v1124_v60 = vld [vmem:[%s1492_s5 + $0x30] sm:$0xff]   ;;  %v1381_v0 = vshrl.u32 %v57_v63, 7  ;;  %vm751_vm3 = vcmask 523264  }
  0x12   :  { %563 = vmatpush1.bf16.msra.mxu0 %v1057_v24  ;;  %v1118_v54 = vld [vmem:[%s1492_s5] sm:$0xff]   ;;  %v1119_v55 = vld [vmem:[%s1492_s5 + $0x8] sm:$0xff]   ;;  %v1125_v61 = vld [vmem:[%s1492_s5 + $0x38] sm:$0xff]   ;;  %vm884_vm4 = vcmask 7168  }
  0x13   :  { %172 = vmatpush1.bf16.msra.mxu1 %v155_v16  ;;  %564 = vmatprep.subr.bf16.mxu0 %v1058_v25  ;;  %v1122_v58 = vld [vmem:[%s1492_s5 + $0x20] sm:$0xff]   ;;  %v1123_v59 = vld [vmem:[%s1492_s5 + $0x28] sm:$0xff]   ;;  %v59_v2 = vsub.s32 0, %v1381_v0  ;;  %v63_v4 = vsub.s32 1, %v1381_v0  ;;  %v1097_v24 = vld [vmem:[%s1491_s3 + $0x110] ss:$8 sps:$4 sm:$0xff]  }
  0x14   :  { %989 = vmatprep.subr.bf16.mxu1 %v1135_v20  ;;  %v1126_v62 = vld [vmem:[%s1492_s5 + $0x40] sm:$0xff]   ;;  %v1103_v30 = vld [vmem:[%s1491_s3 + $0x130] ss:$8 sps:$4 sm:$0xff]  }
  0x15   :  { %v55_v3 = vld [vmem:[%s1493_s2] sm:$0x7]  ;;  %v1102_v25 = vld [vmem:[%s1491_s3 + $0x124] ss:$8 sps:$4 sm:$0xff]  }
  0x16   :  { %908 = vmatmul.mubr.msk.bf16.vlgmr.msra.gmra.mrb[0].mxu1 %vm149_vm1, %v1040_v18  ;;  %565 = vmatpush1.bf16.msra.mxu0 %v1060_v27  ;;  %v60_v5 = vrot.slane %v55_v3, %v59_v2  ;;  %v64_v6 = vrot.slane %v55_v3, %v63_v4  ;;  %v1094_v22 = vld [vmem:[%s1491_s3 + $0x100] ss:$8 sps:$4 sm:$0xff]  }
  0x17   :  { %990 = vmatpush3.bf16.msra.mxu1 %v1041_v19  ;;  %999 = vmatprep.mubr.msk.bf16.mxu1 %vm1136_vm2, %v1135_v20  ;;  %v1100_v27 = vld [vmem:[%s1491_s3 + $0x120] ss:$8 sps:$4 sm:$0xff]  }
  0x18   :  { %991 = vmatprep.subr.bf16.mxu1 %v1135_v20  ;;  %566 = vmatprep.subr.bf16.mxu0 %v1061_v29 }
  0x1a   :  { %567 = vmatpush1.bf16.msra.mxu0 %v1063_v31 }
  0x1b   :  { %992 = vmatpush3.bf16.msra.mxu1 %v1042_v23  ;;  %568 = vmatprep.subr.bf16.mxu0 %v1064_v32  ;;  %v1099_v23 = vld [vmem:[%s1491_s3 + $0x114] ss:$8 sps:$4 sm:$0xff]   ;;  %v1108_v32 = vld [vmem:[%s1491_s3 + $0x144] ss:$8 sps:$4 sm:$0xff]  }
  0x1c   :  { %993 = vmatprep.subr.bf16.mxu1 %v1135_v20 }
  0x1e   :  { %569 = vmatpush1.bf16.msra.mxu0 %v1066_v33 }
  0x1f   :  { %994 = vmatpush3.bf16.msra.mxu1 %v1043_v26  ;;  %570 = vmatprep.subr.bf16.mxu0 %v1067_v35  ;;  %v67_v26 = vsub.s32 2, %v1381_v0  ;;  %v1130_v0 = vld [vmem:[%s1494_s7] sm:$0xff]  }
  0x20   :  { %995 = vmatprep.subr.bf16.mxu1 %v1135_v20 }
  0x21   :  { %v68_v29 = vrot.slane %v55_v3, %v67_v26 }
  0x22   :  { %571 = vmatpush1.bf16.msra.mxu0 %v1069_v36 }
  0x23   :  { %996 = vmatpush3.bf16.msra.mxu1 %v1044_v28  ;;  %572 = vmatprep.subr.bf16.mxu0 %v1070_v37  ;;  %v1105_v28 = vld [vmem:[%s1491_s3 + $0x134] ss:$8 sps:$4 sm:$0xff]  }
  0x24   :  { %997 = vmatprep.subr.bf16.mxu1 %v1135_v20 }
  0x26   :  { %573 = vmatpush1.bf16.msra.mxu0 %v1072_v38 }
  0x27   :  { %998 = vmatpush3.bf16.msra.mxu1 %v161_v34  ;;  %574 = vmatprep.subr.bf16.mxu0 %v1073_v39  ;;  %v1106_v39 = vld [vmem:[%s1491_s3 + $0x140] ss:$8 sps:$4 sm:$0xff]  }
  0x28   :  { %755 = vmatprep.subr.bf16.mxu1 %v1134_v1 }
  0x2a   :  { %1000 = vmatmul.mubr.msk.bf16.vlgmr.msra.gmra.mrb[4].mxu1 %vm149_vm1, %v1040_v18  ;;  %575 = vmatpush1.bf16.msra.mxu0 %v1075_v40  ;;  %v1111_v40 = vld [vmem:[%s1491_s3 + $0x154] ss:$8 sps:$4 sm:$0xff]  }
  0x2b   :  { %576 = vmatprep.subr.bf16.mxu0 %v1076_v41  ;;  %756 = vmatpush1.bf16.msra.mxu1 %v1118_v54 }
  0x2c   :  { %757 = vmatprep.subr.bf16.mxu1 %v1134_v1 }
  0x2e   :  { %577 = vmatpush1.bf16.msra.mxu0 %v1078_v42 }
  0x2f   :  { %578 = vmatprep.subr.bf16.mxu0 %v1079_v43  ;;  %758 = vmatpush1.bf16.msra.mxu1 %v1119_v55  ;;  %v1109_v43 = vld [vmem:[%s1491_s3 + $0x150] ss:$8 sps:$4 sm:$0xff]  }
  0x30   :  { %759 = vmatprep.subr.bf16.mxu1 %v1134_v1 }
  0x32   :  { %579 = vmatpush1.bf16.msra.mxu0 %v1081_v44  ;;  %v1114_v44 = vld [vmem:[%s1491_s3 + $0x164] ss:$8 sps:$4 sm:$0xff]  }
  0x33   :  { %580 = vmatprep.subr.bf16.mxu0 %v1082_v45  ;;  %760 = vmatpush1.bf16.msra.mxu1 %v1120_v56  ;;  %v1112_v45 = vld [vmem:[%s1491_s3 + $0x160] ss:$8 sps:$4 sm:$0xff]  }
  0x34   :  { %761 = vmatprep.subr.bf16.mxu1 %v1134_v1 }
  0x36   :  { %581 = vmatpush1.bf16.msra.mxu0 %v1084_v46  ;;  %v1117_v46 = vld [vmem:[%s1491_s3 + $0x174] ss:$8 sps:$4 sm:$0xff]  }
  0x37   :  { %582 = vmatprep.subr.bf16.mxu0 %v1085_v47  ;;  %762 = vmatpush1.bf16.msra.mxu1 %v1121_v57  ;;  %v1115_v47 = vld [vmem:[%s1491_s3 + $0x170] ss:$8 sps:$4 sm:$0xff]  }
  0x38   :  { %763 = vmatprep.subr.bf16.mxu1 %v1134_v1 }
  0x3a   :  { %583 = vmatpush1.bf16.msra.mxu0 %v1087_v48  ;;  %v1127_v48 = vld [vmem:[%s1492_s5 + $0x48] sm:$0xff]  }
  0x3b   :  { %584 = vmatprep.subr.bf16.mxu0 %v1088_v49  ;;  %764 = vmatpush1.bf16.msra.mxu1 %v1122_v58  ;;  %v1128_v49 = vld [vmem:[%s1492_s5 + $0x50] sm:$0xff]  }
  0x3c   :  { %765 = vmatprep.subr.bf16.mxu1 %v1134_v1 }
  0x3e   :  { %585 = vmatpush1.bf16.msra.mxu0 %v1090_v50  ;;  %v1129_v50 = vld [vmem:[%s1492_s5 + $0x58] sm:$0xff]  }
  0x3f   :  { %586 = vmatprep.subr.bf16.mxu0 %v1091_v51  ;;  %766 = vmatpush1.bf16.msra.mxu1 %v1123_v59  ;;  %v304_v51 = vld [vmem:[%s1495_s4] sm:$0x3] }
  0x40   :  { %767 = vmatprep.subr.bf16.mxu1 %v1134_v1 }
  0x42   :  { %587 = vmatpush1.bf16.msra.mxu0 %v1093_v52  ;;  %v309_v52 = vrot.slane %v304_v51, %v59_v2  ;;  %v1131_v2 = vld [vmem:[%s1494_s7 + $0x8] sm:$0xff]  }
  0x43   :  { %599 = vmatprep.subr.bf16.mxu0 %v1096_v53  ;;  %768 = vmatpush1.bf16.msra.mxu1 %v1124_v60  ;;  %v313_v53 = vrot.slane %v304_v51, %v63_v4  ;;  %v1132_v4 = vld [vmem:[%s1494_s7 + $0x10] sm:$0xff]  }
  0x44   :  { %769 = vmatprep.subr.bf16.mxu1 %v1134_v1 }
  0x47   :  { %770 = vmatpush1.bf16.msra.mxu1 %v1125_v61 }
  0x48   :  { %771 = vmatprep.subr.bf16.mxu1 %v1134_v1 }
  0x4b   :  { %772 = vmatpush1.bf16.msra.mxu1 %v1126_v62 }
  0x4c   :  { %773 = vmatprep.subr.bf16.mxu1 %v1134_v1 }
  0x4f   :  { %774 = vmatpush1.bf16.msra.mxu1 %v1127_v48 }
  0x50   :  { %775 = vmatprep.subr.bf16.mxu1 %v1134_v1 }
  0x53   :  { %776 = vmatpush1.bf16.msra.mxu1 %v1128_v49 }
  0x54   :  { %777 = vmatprep.subr.bf16.mxu1 %v1134_v1 }
  0x57   :  { %778 = vmatpush1.bf16.msra.mxu1 %v1129_v50 }
  0x58   :  { %1003 = vmatprep.subr.bf16.mxu1 %v1135_v20 }
  0xe9   :  { %v197_v7 = vpop.f32.mrb[0].mxu1 }
  0xea   :  { %v198_v8 = vadd.f32 %v197_v7, %v60_v5  ;;  %v199_v9 = vpop.f32.mrb[1].mxu1  ;;  %v1133_v7 = vld [vmem:[%s1494_s7 + $0x18] sm:$0xff]  }
  0xeb   :  { %v200_v10 = vadd.f32 %v199_v9, %v64_v6  ;;  %v201_v11 = vpop.f32.mrb[2].mxu1  ;;  %v958_v9 = vld [vmem:[%s1497_s6] ss:$0 sm:$0xff] }
  0xec   :  { %v202_v12 = vadd.f32 %v201_v11, %v60_v5  ;;  %v203_v13 = vpop.f32.mrb[3].mxu1  ;;  %v247_v15 = vmax.f32 %v198_v8, 0.0  ;;  %v14_v8 = vstv %s1496_s8 }
  0xed   :  { %v204_v14 = vadd.f32 %v203_v13, %v64_v6  ;;  %v248_v17 = vmax.f32 %v200_v10, 0.0  ;;  %15 = vst [vmem:[#allocation2] sm:$0x1] %v14_v8 }
  0xee   :  { %v250_v16 = vmax.f32 %v202_v12, 0.0 }
  0xef   :  { %v251_v18 = vmax.f32 %v204_v14, 0.0 }
  0xf0   :  { %v253_v19 = vpack.c.bf16 %v250_v16, %v247_v15 }
  0xf1   :  { %v254_v21 = vpack.c.bf16 %v251_v18, %v248_v17 }
  0xf3   :  { %588 = vmatprep.mubr.bf16.mxu0 %v254_v21 }
  0xf4   :  { %589 = vmatmul.mubr.bf16.vlgmr.msra.gmra.mrb[0].mxu0 %v253_v19  ;;  %v977_v18 = vld [vmem:[#allocation2] ss:$0 sm:$0xff] }
  0xf5   :  { %600 = vmatpush1.bf16.msra.mxu0 %v1094_v22  ;;  %631 = vmatprep.mubr.bf16.mxu0 %v1134_v1 }
  0xf6   :  { %601 = vmatprep.subr.bf16.mxu0 %v1099_v23 }
  0xf9   :  { %602 = vmatpush1.bf16.msra.mxu0 %v1097_v24 }
  0xfa   :  { %603 = vmatprep.subr.bf16.mxu0 %v1102_v25 }
  0xfd   :  { %604 = vmatpush1.bf16.msra.mxu0 %v1100_v27  ;;  %v240_v31 = vpop.f32.mrb[4].mxu1 }
  0xfe   :  { %605 = vmatprep.subr.bf16.mxu0 %v1105_v28  ;;  %v241_v33 = vadd.f32 %v240_v31, %v68_v29  ;;  %v1001_v34 = vpop.f32.mrb[5].mxu1 }
  0xff   :  { %v243_v35 = vpop.f32.mrb[6].mxu1 }
 0x100   :  { %v249_v36 = vmax.f32 %v241_v33, 0.0  ;;  %v244_v37 = vadd.f32 %v243_v35, %v68_v29  ;;  %v1002_v38 = vpop.f32.mrb[7].mxu1 }
 0x101   :  { %606 = vmatpush1.bf16.msra.mxu0 %v1103_v30 }
 0x102   :  { %607 = vmatprep.subr.bf16.mxu0 %v1108_v32  ;;  %v252_v41 = vmax.f32 %v244_v37, 0.0 }
 0x104   :  { %v255_v42 = vpack.c.bf16 %v252_v41, %v249_v36 }
 0x105   :  { %608 = vmatpush1.bf16.msra.mxu0 %v1106_v39 }
 0x106   :  { %609 = vmatprep.subr.bf16.mxu0 %v1111_v40 }
 0x109   :  { %610 = vmatpush1.bf16.msra.mxu0 %v1109_v43 }
 0x10a   :  { %611 = vmatprep.subr.bf16.mxu0 %v1114_v44 }
 0x10d   :  { %612 = vmatpush1.bf16.msra.mxu0 %v1112_v45 }
 0x10e   :  { %613 = vmatprep.subr.bf16.mxu0 %v1117_v46 }
 0x111   :  { %614 = vmatpush1.bf16.msra.mxu0 %v1115_v47 }
 0x114   :  { %632 = vmatmul.mubr.bf16.vlgmr.msra.gmra.mrb[0].mxu0 %v255_v42 }
 0x1e7   :  { %v633_v54 = vpop.f32.mrb[0].mxu0 }
 0x1e8   :  { %v1015_v55 = vadd.f32 %v633_v54, %v309_v52  ;;  %v635_v1 = vpop.f32.mrb[1].mxu0 }
 0x1e9   :  { %v1016_v56 = vadd.f32 %v635_v1, %v313_v53  ;;  %v637_v57 = vpop.f32.mrb[2].mxu0 }
 0x1ea   :  { %v1017_v58 = vadd.f32 %v637_v57, %v309_v52  ;;  %v639_v59 = vpop.f32.mrb[3].mxu0  ;;  %v642_v61 = vmax.f32 %v1015_v55, 0.0 }
 0x1eb   :  { %v1018_v60 = vadd.f32 %v639_v59, %v313_v53  ;;  %v643_v63 = vmax.f32 %v1016_v56, 0.0 }
 0x1ec   :  { %v644_v62 = vmax.f32 %v1017_v58, 0.0 }
 0x1ed   :  { %v645_v3 = vmax.f32 %v1018_v60, 0.0 }
 0x1ee   :  { %v646_v5 = vpack.c.bf16 %v644_v62, %v642_v61 }
 0x1ef   :  { %v647_v6 = vpack.c.bf16 %v645_v3, %v643_v63 }
 0x1f1   :  { %971 = vmatprep.mubr.msk.bf16.mxu1 %vm751_vm3, %v647_v6 }
 0x1f2   :  { %788 = vmatmul.mubr.bf16.vlgmr.msra.gmra.mrb[8].mxu1 %v646_v5 }
 0x1f3   :  { %1004 = vmatpush3.bf16.msra.mxu1 %v1130_v0  ;;  %1011 = vmatprep.mubr.msk.bf16.mxu1 %vm1136_vm2, %v1135_v20 }
 0x1f4   :  { %1005 = vmatprep.subr.bf16.mxu1 %v1135_v20 }
 0x1f7   :  { %1006 = vmatpush3.bf16.msra.mxu1 %v1131_v2 }
 0x1f8   :  { %1007 = vmatprep.subr.bf16.mxu1 %v1135_v20 }
 0x1fb   :  { %1008 = vmatpush3.bf16.msra.mxu1 %v1132_v4 }
 0x1fc   :  { %1009 = vmatprep.subr.bf16.mxu1 %v1135_v20 }
 0x1ff   :  { %1010 = vmatpush3.bf16.msra.mxu1 %v1133_v7 }
 0x2c5   :  { %v789_v10 = vpop.f32.mrb[8].mxu1 }
 0x2c6   :  { %v790_v11 = vadd.f32 %v958_v9, %v789_v10  ;;  %v791_v12 = vpop.f32.mrb[9].mxu1 }
 0x2c7   :  { %v792_v13 = vpop.f32.mrb[10].mxu1 }
 0x2c8   :  { %v793_v14 = vadd.f32 %v958_v9, %v792_v13  ;;  %v794_v20 = vpop.f32.mrb[11].mxu1  ;;  %v796_v15 = vmax.f32 %v790_v11, 0.0 }
 0x2ca   :  { %v797_v16 = vmax.f32 %v793_v14, 0.0 }
 0x2cc   :  { %v798_v17 = vpack.c.bf16 %v797_v16, %v796_v15 }
 0x2ce   :  { %1012 = vmatmul.mubr.msk.bf16.vlgmr.msra.gmra.mrb[12].mxu1 %vm751_vm3, %v798_v17 }
 0x3a1   :  { %v868_v19 = vpop.f32.mrb[12].mxu1 }
 0x3a2   :  { %v882_v21 = vadd.f32 %v977_v18, %v868_v19  ;;  %v1013_v22 = vpop.f32.mrb[13].mxu1 }
 0x3a3   :  { %v871_v23 = vpop.f32.mrb[14].mxu1 }
 0x3a4   :  { %885 = vst.msk [vmem:[%s1498_s9] sm:$0xff] %vm884_vm4, %v882_v21  ;;  %v883_v24 = vadd.f32 %v977_v18, %v871_v23  ;;  %v1014_v25 = vpop.f32.mrb[15].mxu1 }
 0x3a6   :  { %886 = vst.msk [vmem:[%s1498_s9 + $0x8] sm:$0xff] %vm884_vm4, %v883_v24 }

</bundles_post_ra>
